<compile_context>
chip_gen: v5e
topology: v5e:2x2
jax: 0.10.0
libtpu: 0.0.40
codegen_flags: <defaults>
</compile_context>

<pallas_src>
import functools
from typing import NamedTuple

import numpy as np
import jax
import jax.numpy as jnp
from jax import lax
from jax.experimental import pallas as pl
from jax.experimental.pallas import tpu as pltpu


def _round_up(v, m):
    return -(-v // m) * m


class RubberBotParams(NamedTuple):
    w_step: jax.Array    # (8, 8)   fused single-step weight: [x|u] -> [x_new | y]
    m_traj: jax.Array    # (ZP, W_OUT) K-step weight: z -> packed [x_{+1..+K} | y_{+1..+K}]
    m_carry: jax.Array   # (ZP, ZP)    K-step carry:  z -> z_{+K} (x in lanes :n, rest 0)
    n: int
    n_in: int
    n_out: int
    k_steps: int         # K (timesteps folded into one matmul)
    zp: int              # padded z width (n + K*n_in rounded up to 8)
    w_x: int             # K * n
    w_out: int           # w_x (+ K*n_out when C != I)
    c_is_identity: bool


# --------------------------------- kernels ----------------------------------

def _step_kernel(z_ref, w_ref, out_ref):
    # Single fused matmul: columns [:n] = x_new, [n:n+n_out] = y (when C != I).
    out_ref[...] = jnp.dot(z_ref[...], w_ref[...], preferred_element_type=jnp.float32)


def _rollout_kernel(x0_ref, u_ref, mc_ref, mt_ref, out_ref, z_scr, *, inner):
    """One grid step = `inner` K-blocks = inner*K timesteps.

    z invariant: lanes [:n] hold the state, lanes [n:] are zero (guaranteed because
    m_carry columns n.. are zero and x0/us padding is zero).  u_ref[i] holds the K
    packed controls in lanes [n : n+K*n_in] with zero state lanes, so z + u is exact.
    """
    @pl.when(pl.program_id(0) == 0)
    def _():
        z_scr[...] = x0_ref[...]

    mc = mc_ref[...]
    mt = mt_ref[...]

    def body(i, z):
        zi = z + u_ref[i]
        # Lane-dense (>=128-wide) trajectory block: all K states (+ K observations).
        out_ref[i] = jnp.dot(zi, mt, preferred_element_type=jnp.float32)
        # Vreg-resident carry to the next K-block (no per-step VMEM round trip).
        return jnp.dot(zi, mc, preferred_element_type=jnp.float32)

    z_scr[...] = lax.fori_loop(0, inner, body, z_scr[...], unroll=True)


# ------------------------------- param setup --------------------------------

def make_rubber_bot_params(m=0.5, c=0.7, k=1.9, width=10, height=5, fully_observed=True):
    """Deterministic parameter construction mirroring RubberBot.__init__."""
    points_count = width * height

    # Adjacency matrix (built as in __init__; unused by forward).
    idx = np.arange(points_count)
    ya, xa = idx // width, idx % width
    manhattan = np.abs(xa[None, :] - xa[:, None]) + np.abs(ya[None, :] - ya[:, None])
    neighbor = manhattan == 1
    am = (neighbor.astype(np.int32) - neighbor.T.astype(np.int32))
    am = jnp.asarray(am, jnp.int32)

    m1 = m2 = m
    c1 = c2 = c
    mat_a = np.zeros((4, 4), np.float64)
    mat_a[0, 2] = 1.0
    mat_a[1, 3] = 1.0
    mat_a[2, 0] = -k / m1
    mat_a[2, 1] = k / m1
    mat_a[2, 2] = -c1 / m1
    mat_a[3, 0] = k / m2
    mat_a[3, 1] = -k / m2
    mat_a[3, 3] = -c2 / m2

    mat_b = np.zeros((4, 1), np.float64)
    mat_b[2, 0] = 1.0 / m1

    if fully_observed:
        mat_c = np.eye(4, dtype=np.float64)
    else:
        mat_c = np.zeros((2, 4), np.float64)
        mat_c[0, 0] = 1.0
        mat_c[1, 1] = 1.0

    return (am,
            jnp.asarray(mat_a, jnp.float32),
            jnp.asarray(mat_b, jnp.float32),
            jnp.asarray(mat_c, jnp.float32))


def prepare_rubber_bot(mat_a, mat_b, mat_c, dt=0.01, k_steps=None):
    """One-time host-side weight prep (numpy float64, no device sync / no tracing)."""
    A = np.asarray(jax.device_get(mat_a), np.float64)
    B = np.asarray(jax.device_get(mat_b), np.float64)
    C = np.asarray(jax.device_get(mat_c), np.float64)
    n, n_in, n_out = A.shape[0], B.shape[1], C.shape[0]

    # Host-side identity check (avoids jnp.array_equal device sync / tracer issues).
    c_is_identity = (n_out == n) and bool(np.array_equal(C, np.eye(n)))

    a_eul = np.eye(n) + dt * A     # x_new = x @ a_eul^T + u @ b_eul^T
    b_eul = dt * B

    # ---- single-step fused weight (8x8): columns [:n]=x_new, [n:n+n_out]=y ----
    assert n + n_in <= 8, "state + input must fit one 8-wide tile"
    assert c_is_identity or n + n_out <= 8, "state + output must fit one 8-wide tile"
    w_step = np.zeros((8, 8), np.float64)
    w_step[:n, :n] = a_eul.T
    w_step[n:n + n_in, :n] = b_eul.T
    if not c_is_identity:
        w_step[:n + n_in, n:n + n_out] = w_step[:n + n_in, :n] @ C.T

    # ---- K-step block-unrolled weights ----
    if k_steps is None:
        k_steps = max(1, 128 // n)     # K*n ~ one full lane row (128) -> lane-dense output
    K = int(k_steps)
    zp = _round_up(n + K * n_in, 8)
    w_x = K * n
    w_y = 0 if c_is_identity else K * n_out
    w_out = w_x + w_y

    powers = [np.eye(n)]
    for _ in range(K):
        powers.append(powers[-1] @ a_eul)

    m_x = np.zeros((zp, w_x), np.float64)
    for k in range(K):
        m_x[:n, k * n:(k + 1) * n] = powers[k + 1].T
        for j in range(k + 1):
            m_x[n + j * n_in: n + (j + 1) * n_in, k * n:(k + 1) * n] = (powers[k - j] @ b_eul).T

    m_carry = np.zeros((zp, zp), np.float64)
    m_carry[:, :n] = m_x[:, (K - 1) * n: K * n]

    if c_is_identity:
        m_traj = m_x
    else:
        m_y = np.zeros((zp, w_y), np.float64)
        for k in range(K):
            m_y[:, k * n_out:(k + 1) * n_out] = m_x[:, k * n:(k + 1) * n] @ C.T
        m_traj = np.concatenate([m_x, m_y], axis=1)

    # Invariants the rollout recurrence relies on (keep these if editing weights):
    assert np.all(m_carry[:, n:] == 0.0), "carry weight must zero all non-state lanes"
    assert np.all(m_traj[n + K * n_in:, :] == 0.0), "padded contraction rows must be zero"
    assert np.all(w_step[n + n_in:, :] == 0.0), "padded single-step rows must be zero"

    return RubberBotParams(
        w_step=jnp.asarray(w_step, jnp.float32),
        m_traj=jnp.asarray(m_traj, jnp.float32),
        m_carry=jnp.asarray(m_carry, jnp.float32),
        n=n, n_in=n_in, n_out=n_out,
        k_steps=K, zp=zp, w_x=w_x, w_out=w_out,
        c_is_identity=c_is_identity)


# ------------------------------- forward APIs --------------------------------

def rubber_bot_forward(x, u, params: RubberBotParams):
    """Pallas-backed single step: forward(x, u) -> (x_new, y)."""
    batch = x.shape[0]
    bp = _round_up(max(batch, 8), 8)
    n, n_in, n_out = params.n, params.n_in, params.n_out
    f32 = jnp.float32

    z = jnp.concatenate([x.astype(f32), u.astype(f32)], axis=-1)
    z = jnp.pad(z, ((0, bp - batch), (0, 8 - (n + n_in))))

    vmem = pl.BlockSpec(memory_space=pltpu.MemorySpace.VMEM)
    out = pl.pallas_call(
        _step_kernel,
        out_shape=jax.ShapeDtypeStruct((bp, 8), f32),
        in_specs=[vmem, vmem],
        out_specs=vmem,
    )(z, params.w_step)

    x_new = out[:batch, :n]
    if params.c_is_identity:
        return x_new, x_new
    return x_new, out[:batch, n:n + n_out]


def rubber_bot_rollout(x0, us, params: RubberBotParams, inner=8):
    """Fused T-step rollout: K=32 timesteps per matmul, `inner` matmuls per grid step.

    x0: (batch, n), us: (T, batch, n_in) -> xs: (T, batch, n), ys: (T, batch, n_out)
    """
    T, batch, n_in = us.shape
    n, n_out, K = params.n, params.n_out, params.k_steps
    zp, w_x, w_out = params.zp, params.w_x, params.w_out
    bp = _round_up(max(batch, 8), 8)
    f32 = jnp.float32

    nb = -(-T // K)                       # number of K-step blocks
    inner = max(1, min(int(inner), nb))
    nb_pad = _round_up(nb, inner)
    n_chunks = nb_pad // inner
    t_pad = nb_pad * K

    # Pack controls time-major along lanes: us_p[blk, b, n + l*n_in + d] = u[blk*K+l, b, d]
    us_f = jnp.zeros((t_pad, batch, n_in), f32).at[:T].set(us.astype(f32))
    us_f = us_f.reshape(nb_pad, K, batch, n_in).transpose(0, 2, 1, 3)
    us_f = us_f.reshape(nb_pad, batch, K * n_in)
    us_p = jnp.zeros((nb_pad, bp, zp), f32).at[:, :batch, n:n + K * n_in].set(us_f)

    x0_p = jnp.zeros((bp, zp), f32).at[:batch, :n].set(x0.astype(f32))

    x0_spec = pl.BlockSpec((bp, zp), lambda c: (0, 0))
    u_spec = pl.BlockSpec((inner, bp, zp), lambda c: (c, 0, 0))
    mc_spec = pl.BlockSpec((zp, zp), lambda c: (0, 0))
    mt_spec = pl.BlockSpec((zp, w_out), lambda c: (0, 0))
    out_spec = pl.BlockSpec((inner, bp, w_out), lambda c: (c, 0, 0))

    cost = pl.CostEstimate(
        flops=2 * nb_pad * bp * zp * (w_out + zp),
        transcendentals=0,
        bytes_accessed=4 * (nb_pad * bp * (zp + w_out) + bp * zp + zp * (zp + w_out)))

    out_p = pl.pallas_call(
        functools.partial(_rollout_kernel, inner=inner),
        out_shape=jax.ShapeDtypeStruct((nb_pad, bp, w_out), f32),
        grid=(n_chunks,),
        in_specs=[x0_spec, u_spec, mc_spec, mt_spec],
        out_specs=out_spec,
        scratch_shapes=[pltpu.VMEM((bp, zp), f32)],   # chunk-boundary state carry
        compiler_params=pltpu.CompilerParams(dimension_semantics=("arbitrary",)),
        cost_estimate=cost,
    )(x0_p, us_p, params.m_carry, params.m_traj)

    # Unpack time from lanes: (nb_pad, bp, K, n) -> (T, batch, n)
    xs = out_p[:, :, :w_x].reshape(nb_pad, bp, K, n).transpose(0, 2, 1, 3)
    xs = xs.reshape(nb_pad * K, bp, n)[:T, :batch, :]
    if params.c_is_identity:
        return xs, xs
    ys = out_p[:, :, w_x:w_x + K * n_out].reshape(nb_pad, bp, K, n_out).transpose(0, 2, 1, 3)
    ys = ys.reshape(nb_pad * K, bp, n_out)[:T, :batch, :]
    return xs, ys


# -------------------------------- references ---------------------------------

def _reference_forward(x, u, mat_a, mat_b, mat_c, dt):
    dx = x @ mat_a.T + u @ mat_b.T
    x_new = x + dt * dx
    y = x_new @ mat_c.T
    return x_new, y


def _reference_rollout(x0, us, mat_a, mat_b, mat_c, dt):
    def step(x, u):
        x_new, y = _reference_forward(x, u, mat_a, mat_b, mat_c, dt)
        return x_new, (x_new, y)
    _, (xs, ys) = lax.scan(step, x0, us)
    return xs, ys


if __name__ == "__main__":
    dt = 0.01
    key = jax.random.PRNGKey(0)
    kx, ku, kus = jax.random.split(key, 3)
    batch = 2
    x = jax.random.normal(kx, (batch, 4), dtype=jnp.float32)   # [pos1, pos2, vel1, vel2]
    u = jax.random.normal(ku, (batch, 1), dtype=jnp.float32)   # single control input

    # ---- single step, fully observed (C == I): y aliased to x_new ----
    am, A, B, C = make_rubber_bot_params(fully_observed=True)
    params = prepare_rubber_bot(A, B, C, dt=dt)
    x_new, y = rubber_bot_forward(x, u, params)
    jax.block_until_ready((x_new, y))
    x_ref, y_ref = _reference_forward(x, u, A, B, C, dt)
    assert x_new.shape == (batch, 4) and y.shape == (batch, 4)
    assert jnp.allclose(x_new, x_ref, atol=1e-5, rtol=1e-5)
    assert jnp.allclose(y, y_ref, atol=1e-5, rtol=1e-5)

    # ---- single step, partially observed (general C): fused [x_new | y] output ----
    am2, A2, B2, C2 = make_rubber_bot_params(fully_observed=False)
    params2 = prepare_rubber_bot(A2, B2, C2, dt=dt)
    x_new2, y2 = rubber_bot_forward(x, u, params2)
    jax.block_until_ready((x_new2, y2))
    x_ref2, y_ref2 = _reference_forward(x, u, A2, B2, C2, dt)
    assert x_new2.shape == (batch, 4) and y2.shape == (batch, 2)
    assert jnp.allclose(x_new2, x_ref2, atol=1e-5, rtol=1e-5)
    assert jnp.allclose(y2, y_ref2, atol=1e-5, rtol=1e-5)

    # ---- long rollout (T not a multiple of the 256-step chunk: exercises padding) ----
    T = 300
    us = jax.random.normal(kus, (T, batch, 1), dtype=jnp.float32)
    xs, ys = rubber_bot_rollout(x, us, params)
    jax.block_until_ready((xs, ys))
    xs_ref, ys_ref = _reference_rollout(x, us, A, B, C, dt)
    assert xs.shape == (T, batch, 4) and ys.shape == (T, batch, 4)
    assert jnp.allclose(xs, xs_ref, atol=1e-3, rtol=1e-3)
    assert jnp.allclose(ys, ys_ref, atol=1e-3, rtol=1e-3)

    xs2, ys2 = rubber_bot_rollout(x, us, params2)
    jax.block_until_ready((xs2, ys2))
    xs_ref2, ys_ref2 = _reference_rollout(x, us, A2, B2, C2, dt)
    assert xs2.shape == (T, batch, 4) and ys2.shape == (T, batch, 2)
    assert jnp.allclose(xs2, xs_ref2, atol=1e-3, rtol=1e-3)
    assert jnp.allclose(ys2, ys_ref2, atol=1e-3, rtol=1e-3)

    # ---- short rollout (T < one K-block: exercises heavy padding / truncation) ----
    T_s = 8
    us_s = us[:T_s]
    xs_s, ys_s = rubber_bot_rollout(x, us_s, params)
    jax.block_until_ready((xs_s, ys_s))
    xs_sref, ys_sref = _reference_rollout(x, us_s, A, B, C, dt)
    assert xs_s.shape == (T_s, batch, 4)
    assert jnp.allclose(xs_s, xs_sref, atol=1e-4, rtol=1e-4)
    assert jnp.allclose(ys_s, ys_sref, atol=1e-4, rtol=1e-4)

    print("KERNEL_OK")
</pallas_src>

<mosaic_0001>
module attributes {stable_mosaic.version = 11 : i64} {
  func.func @_step_kernel(%arg0: memref<8x8xf32, #tpu.memory_space<vmem>>, %arg1: memref<8x8xf32, #tpu.memory_space<vmem>>, %arg2: memref<8x8xf32, #tpu.memory_space<vmem>>) attributes {dimension_semantics = [], scalar_prefetch = 0 : i64, scratch_operands = 0 : i64, tpu.core_type = #tpu.core_type<tc>} {
    %c0 = arith.constant 0 : index
    %c0_0 = arith.constant 0 : index
    %0 = vector.load %arg0[%c0, %c0_0] : memref<8x8xf32, #tpu.memory_space<vmem>>, vector<8x8xf32>
    %c0_1 = arith.constant 0 : index
    %c0_2 = arith.constant 0 : index
    %1 = vector.load %arg1[%c0_1, %c0_2] : memref<8x8xf32, #tpu.memory_space<vmem>>, vector<8x8xf32>
    %cst = arith.constant dense<0.000000e+00> : vector<8x8xf32>
    %2 = tpu.matmul %0, %1, %cst {dimension_numbers = #tpu.dot_dimension_numbers<[1], [0], [0], [1], [0, 0, 1, 1], [], []>} : vector<8x8xf32>, vector<8x8xf32>, vector<8x8xf32> -> vector<8x8xf32>
    %c0_3 = arith.constant 0 : index
    %c0_4 = arith.constant 0 : index
    %3 = vector.load %arg2[%c0_3, %c0_4] : memref<8x8xf32, #tpu.memory_space<vmem>>, vector<8x8xf32>
    tpu.vector_store %arg2[%c0_3, %c0_4], %2 {strides = array<i32>} : memref<8x8xf32, #tpu.memory_space<vmem>>, vector<8x8xf32>,
    return
  }
}

</mosaic_0001>

<bundles_post_ra>
// kernel: tpu_custom_call.1
= control target key start
LH: loop header
LB: loop body
LE: loop exit
PB: predicated region body
PF: predicated region fallthrough
CT: control target
= control target key end

     0   :  { %7 = vsyncpa [#allocation3], 0  ;;  %s194_s0 = inlined_call_operand.hbm [shape: f32[8,8], index: 0, kind: input, shape index: {}]   ;;  %s195_s1 = inlined_call_operand.hbm [shape: f32[8,8], index: 1, kind: input, shape index: {}]   ;;  %s196_s2 = inlined_call_operand.hbm [shape: f32[8,8], index: 2, kind: output, shape index: {}]  }
   0x1   :  { %8 = vsyncpa [#allocation6], 0 }
   0x2   :  { %9 = vsyncpa [#allocation4], 0  ;;  %s15_s11 = sshll.u32 %s194_s0, 4  ;;  %s167_s12 = smov [#allocation2]   ;;  %s16_s11 = int_to_ptr.hbm [resolvable:$true] %s15_s11 }
   0x3   :  { %s17_s13 = sshll.u32 %s167_s12, 4  ;;  %s26_s16 = sshll.u32 %s195_s1, 4  ;;  %s18_s13 = int_to_ptr.vmem [resolvable:$true] %s17_s13  ;;  %s27_s16 = int_to_ptr.hbm [resolvable:$true] %s26_s16 }
   0x4   :  { %20 = dma.hbm_to_vmem [thread:$0]  %s16_s11, 128, %s18_s13, [#allocation3]  }
   0x5   :  { %s168_s17 = smov [#allocation5]  }
   0x6   :  { %s28_s18 = sshll.u32 %s168_s17, 4  ;;  %s29_s18 = int_to_ptr.vmem [resolvable:$true] %s28_s18 }
   0x7   :  { %31 = dma.hbm_to_vmem [thread:$0]  %s27_s16, 128, %s29_s18, [#allocation6]  }
   0x8   :  { %161 = dma.done.wait [#allocation3], 128  }
   0x9   :  { %162 = vsyncadd [#allocation3], 4294967168 }
   0xa   :  { %163 = dma.done.wait [#allocation6], 128  }
   0xb   :  { %164 = vsyncadd [#allocation6], 4294967168  ;;  %vm42_vm0 = vcmask 64512   ;;  %v41_v0 = vld [vmem:[#allocation5] sm:$0xff]  ;;  %v40_v1 = vld [vmem:[#allocation2] sm:$0xff]  ;;  %s169_s0 = smov [#allocation7]  }
   0xc   :  { %61 = vmatpush.msra.mxu0 %v41_v0  ;;  %s72_s19 = sshll.u32 %s169_s0, 4  ;;  %s74_s1 = sshll.u32 %s196_s2, 4  ;;  %s73_s19 = int_to_ptr.vmem [resolvable:$true] %s72_s19  ;;  %s75_s1 = int_to_ptr.hbm [resolvable:$true] %s74_s1 }
   0xd   :  { %85 = vmatmul.msk.f32.vlgmr.msra.gmra.mxu0 %vm42_vm0, %v40_v1 }
  0x8a   :  { %v63_v2 = vpop.f32.mrf.mxu0 }
  0x8b   :  { %66 = vst.msk [vmem:[#allocation7] sm:$0xff] %vm42_vm0, %v63_v2 }
  0x8c   :  { %77 = dma.vmem_to_hbm [thread:$0]  %s73_s19, 128, %s75_s1, [#allocation4]  }
  0x8d   :  { %165 = dma.done.wait [#allocation4], 128  }
  0x8e   :  { %166 = vsyncadd [#allocation4], 4294967168 }
  0x8f   :  { %82 = vsyncpa [#allocation3], 1 }
  0x90   :  { %83 = vsyncpa [#allocation6], 1 }
  0x91   :  { %84 = vsyncpa [#allocation4], 1 }

</bundles_post_ra>
